<compile_context>
chip_gen: v6e
topology: v6e:2x2x1
jax: 0.10.0
libtpu: 0.0.40
codegen_flags: <defaults>
</compile_context>

<pallas_src>
import jax
import jax.numpy as jnp
from jax import lax
from jax.experimental import pallas as pl
from jax.experimental.pallas import tpu as pltpu

DROP_THRESHOLD = 0.3            # AttenDrop(drop_threshold=0.3)
H, W = 14, 14                   # the module hard-codes .reshape(14, 14)
HW = H * W
SENT = 1_000_000                # sentinel label for background pixels

# Conservative block-sizing budget: stays well under the 32 MiB scoped VMEM we
# request below (and under v7x's 64 MiB physical VMEM).
_VMEM_BUDGET_BYTES = 24 * 1024 * 1024


# ----------------------------- Pallas kernel ------------------------------ #
def _atten_drop_kernel(x_ref, mask_ref):
    # x_ref block: (Btile, C, HW)  ->  mask_ref block: (Btile, HW)
    x = x_ref[...].astype(jnp.float32)                   # f32 accumulation
    attn = jnp.mean(x, axis=1)                           # torch.mean(dim=1)  (VPU)
    mx = jnp.max(attn, axis=-1, keepdims=True)           # per-image max      (XLU lane reduce)
    mask_ref[...] = (attn > mx * DROP_THRESHOLD).astype(jnp.float32)


def atten_drop(fms):
    """fms: (B, C, H, W) -> drop mask (B, H, W) float32."""
    B, C, h, w = fms.shape
    hw = h * w
    x = fms.reshape(B, C, hw)                            # lane-dense spatial axis

    # Batch tile: whole batch in one step when small; otherwise a multiple of 8
    # (second-to-last dim of the output block) that keeps the double-buffered
    # input + output blocks under the VMEM budget.
    bytes_per_row = 2 * (C + 1) * hw * 4                 # 2x (in + out), f32
    cap = max(1, _VMEM_BUDGET_BYTES // bytes_per_row)
    if B <= cap:
        btile = B
    else:
        btile = max(8, (cap // 8) * 8)

    n_steps = pl.cdiv(B, btile)
    Bp = n_steps * btile
    if Bp != B:
        # zero padding: padded rows give max=0 -> (0 > 0) = 0, sliced off below
        x = jnp.pad(x, ((0, Bp - B), (0, 0), (0, 0)))

    mask = pl.pallas_call(
        _atten_drop_kernel,
        out_shape=jax.ShapeDtypeStruct((Bp, hw), jnp.float32),
        grid=(n_steps,),
        in_specs=[pl.BlockSpec((btile, C, hw), lambda b: (b, 0, 0))],
        out_specs=pl.BlockSpec((btile, hw), lambda b: (b, 0)),
        compiler_params=pltpu.CompilerParams(
            dimension_semantics=("parallel",),            # v7x: 2 TCs split the batch
            vmem_limit_bytes=32 * 1024 * 1024,
        ),
    )(x)
    return mask[:B].reshape(B, h, w)


# ----------------------- plain-JAX post-processing ------------------------ #
# TODO(synk): skimage.measure.label / regionprops (union-find CC labeling) has
# no clean Pallas equivalent; reproduced here with an early-exit min-label
# flood fill (8-connected) in plain JAX.
def _largest_component_bbox(mask):
    """mask: (14, 14) float32 of {0,1} -> [x_lt, y_lt, x_rl, y_rl] int32."""
    m = mask > 0.5
    idx = jnp.arange(H * W, dtype=jnp.int32).reshape(H, W) + 1
    lab0 = jnp.where(m, idx, SENT)

    # 8-connected min-label propagation; converge-early while_loop (typically
    # ~component diameter iterations instead of a fixed 196).
    def cond(state):
        _, changed = state
        return changed

    def body(state):
        lab, _ = state
        p = jnp.pad(lab, 1, mode="constant", constant_values=SENT)  # (16, 16)
        neigh = lab
        for di in range(3):
            for dj in range(3):
                neigh = jnp.minimum(neigh, lax.slice(p, (di, dj), (di + H, dj + W)))
        new_lab = jnp.where(m, neigh, SENT)
        return new_lab, jnp.any(new_lab != lab)

    lab, _ = lax.while_loop(cond, body, (lab0, jnp.array(True)))

    # Component areas via scatter-add over label ids (1..196); bin 0 collects
    # background and is zeroed out.  argmax returns the smallest label among
    # ties, matching skimage's raster first-encounter label order and the
    # reference's areas.index(max(areas)).
    lab_idx = jnp.where(m, lab, 0).reshape(-1)
    areas = jnp.zeros((H * W + 1,), jnp.int32).at[lab_idx].add(1)
    areas = areas.at[0].set(0)
    best_label = jnp.argmax(areas).astype(jnp.int32)

    comp = lab == best_label
    any_comp = jnp.any(comp)
    rows = jnp.arange(H, dtype=jnp.int32)
    cols = jnp.arange(W, dtype=jnp.int32)
    row_has = jnp.any(comp, axis=1)
    col_has = jnp.any(comp, axis=0)
    min_row = jnp.min(jnp.where(row_has, rows, H))
    max_row = jnp.max(jnp.where(row_has, rows, -1)) + 1       # exclusive, like regionprops
    min_col = jnp.min(jnp.where(col_has, cols, W))
    max_col = jnp.max(jnp.where(col_has, cols, -1)) + 1

    # fallback mirrors the reference's "no intersection" branch: bbox = [0,0,14,14]
    min_row = jnp.where(any_comp, min_row, 0)
    min_col = jnp.where(any_comp, min_col, 0)
    max_row = jnp.where(any_comp, max_row, H)
    max_col = jnp.where(any_comp, max_col, W)

    x_lt = jnp.maximum(min_row * 32 - 1, 0)
    y_lt = jnp.maximum(min_col * 32 - 1, 0)
    x_rl = max_row * 32 - 1
    y_rl = max_col * 32 - 1
    return jnp.stack([x_lt, y_lt, x_rl, y_rl]).astype(jnp.int32)


@jax.jit
def olm_forward(fms):
    """OLM.forward: fms (B, C, 14, 14) -> coordinates (B, 4) int32."""
    masks = atten_drop(fms)                       # Pallas hot path
    return jax.vmap(_largest_component_bbox)(masks)


# --------------------------------- main ----------------------------------- #
if __name__ == "__main__":
    key = jax.random.PRNGKey(0)
    B, C = 2, 4
    fms = jax.random.normal(key, (B, C, H, W), dtype=jnp.float32)

    coords = olm_forward(fms)
    jax.block_until_ready(coords)
    print("KERNEL_OK")
</pallas_src>

<mosaic_0001>
module attributes {stable_mosaic.version = 11 : i64} {
  func.func private @main(%arg0: i32) attributes {dimension_semantics = [#tpu.dimension_semantics<core_parallel>], iteration_bounds = array<i64: 2>, tpu.core_type = #tpu.core_type<sc_scalar_subcore>, window_params = []} {
    return
  }
}

module attributes {stable_mosaic.version = 11 : i64} {
  func.func private @main(%arg0: i32) attributes {dimension_semantics = [#tpu.dimension_semantics<core_parallel>], iteration_bounds = array<i64: 2>, tpu.core_type = #tpu.core_type<sc_scalar_subcore>, window_params = []} {
    return
  }
}

module attributes {stable_mosaic.version = 11 : i64} {
  func.func @_atten_drop_kernel(%arg0: i32, %arg1: memref<2x4x196xf32, #tpu.memory_space<vmem>>, %arg2: memref<2x196xf32, #tpu.memory_space<vmem>>) attributes {dimension_semantics = [#tpu.dimension_semantics<parallel>], iteration_bounds = array<i64: 1>, scalar_prefetch = 0 : i64, scratch_operands = 0 : i64, tpu.core_type = #tpu.core_type<tc>, window_params = [{transform_indices = @transform_0, window_bounds = array<i64: 2, 4, 196>}, {transform_indices = @transform_1, window_bounds = array<i64: 2, 196>}]} {
    %c0 = arith.constant 0 : index
    %c0_0 = arith.constant 0 : index
    %c0_1 = arith.constant 0 : index
    %0 = vector.load %arg1[%c0, %c0_0, %c0_1] : memref<2x4x196xf32, #tpu.memory_space<vmem>>, vector<2x4x196xf32>
    %cst = arith.constant dense<0.000000e+00> : vector<2x196xf32>
    %1 = vector.multi_reduction <add>, %0, %cst [1] : vector<2x4x196xf32> to vector<2x196xf32>
    %cst_2 = arith.constant 4.000000e+00 : f32
    %2 = vector.broadcast %cst_2 : f32 to vector<2x196xf32>
    %3 = arith.divf %1, %2 : vector<2x196xf32>
    %cst_3 = arith.constant dense<0xFF800000> : vector<2xf32>
    %4 = vector.multi_reduction <maximumf>, %3, %cst_3 [1] : vector<2x196xf32> to vector<2xf32>
    %5 = vector.shape_cast %4 : vector<2xf32> to vector<2x1xf32>
    %cst_4 = arith.constant 3.000000e-01 : f32
    %6 = vector.broadcast %cst_4 : f32 to vector<2x1xf32>
    %7 = arith.mulf %5, %6 : vector<2x1xf32>
    %8 = vector.broadcast %7 : vector<2x1xf32> to vector<2x196xf32>
    %9 = arith.cmpf ogt, %3, %8 : vector<2x196xf32>
    %10 = arith.extui %9 : vector<2x196xi1> to vector<2x196xi32>
    %11 = arith.sitofp %10 : vector<2x196xi32> to vector<2x196xf32>
    %c0_5 = arith.constant 0 : index
    %c0_6 = arith.constant 0 : index
    %12 = vector.load %arg2[%c0_5, %c0_6] : memref<2x196xf32, #tpu.memory_space<vmem>>, vector<2x196xf32>
    tpu.vector_store %arg2[%c0_5, %c0_6], %11 {strides = array<i32>} : memref<2x196xf32, #tpu.memory_space<vmem>>, vector<2x196xf32>,
    return
  }
  func.func @transform_0(%arg0: i32) -> (i32, i32, i32) {
    %c0_i32 = arith.constant 0 : i32
    %c0_i32_0 = arith.constant 0 : i32
    %c0_i32_1 = arith.constant 0 : i32
    return %arg0, %c0_i32, %c0_i32_0 : i32, i32, i32
  }
  func.func @transform_1(%arg0: i32) -> (i32, i32) {
    %c0_i32 = arith.constant 0 : i32
    %c0_i32_0 = arith.constant 0 : i32
    return %arg0, %c0_i32 : i32, i32
  }
}

</mosaic_0001>

<bundles_post_ra>
// kernel: olm_forward.1
= control target key start
LH: loop header
LB: loop body
LE: loop exit
PB: predicated region body
PF: predicated region fallthrough
CT: control target
= control target key end

     0   :  { %vm16_vm0 = vcmask 1043456   ;;  %vm24_vm1 = vcmask 551936   ;;  %vm55_vm2 = vcmask 1041409   ;;  %vm60_vm3 = vcmask 1041408   ;;  %s158_s0 = inlined_call_operand.vmem [shape: f32[2,4,196], index: 0, kind: input, shape index: {}]   ;;  %s159_s1 = inlined_call_operand.vmem [shape: f32[2,196], index: 1, kind: output, shape index: {}]  }
   0x1   :  { %v8_v0 = vld [vmem:[%s158_s0] sm:$0xff]  ;;  %v9_v1 = vld [vmem:[%s158_s0 + $0x8] sm:$0xff]  ;;  %vm62_vm4 = vcmask 549888   ;;  %v132_v41 = vmov 1983009808   ;;  %v92_v43 = vlaneseq  ;;  %v133_v49 = vmov 0.0  }
   0x2   :  { %v12_v2 = vcombine.high %v8_v0, %v8_v0  ;;  %v13_v3 = vcombine.high %v9_v1, %v9_v1  ;;  %v17_v4 = vsel %vm16_vm0, %v8_v0, 0.0  ;;  %v32_v5 = vsel %vm16_vm0, %v9_v1, 0.0 }
   0x3   :  { %v18_v6 = vrot.slane %v17_v4, 4  ;;  %v33_v7 = vrot.slane %v32_v5, 4  ;;  %v90_v42 = vunpack.c.l.s4 %v132_v41  ;;  %v93_v48 = vshrl.u32 %v92_v43, 7 }
   0x4   :  { %v25_v8 = vsel %vm24_vm1, %v12_v2, 0.0  ;;  %v39_v9 = vsel %vm24_vm1, %v13_v3, 0.0  ;;  %vm117_vm9 = vcmask 551938   ;;  %vm110_vm10 = vcmask 1043459  }
   0x5   :  { %v19_v10 = vadd.f32 %v18_v6, %v17_v4  ;;  %v26_v11 = vrot.slane %v25_v8, 4  ;;  %v34_v12 = vadd.f32 %v33_v7, %v32_v5  ;;  %v40_v13 = vrot.slane %v39_v9, 4  ;;  %vm118_vm13 = vmor %vm117_vm9, %vm60_vm3 }
   0x6   :  { %v91_v46 = vunpack.c.0.s8 %v90_v42  ;;  %vm112_vm11 = vcmask 1045509   ;;  %vm114_vm12 = vcmask 1047559  }
   0x7   :  { %v20_v14 = vrot.slane %v19_v10, 2  ;;  %v27_v15 = vadd.f32 %v26_v11, %v25_v8  ;;  %v35_v16 = vrot.slane %v34_v12, 2  ;;  %v41_v17 = vadd.f32 %v40_v13, %v39_v9 }
   0x8   :  { %v94_v55 = vsub.s32 %v91_v46, %v93_v48 }
   0x9   :  { %v21_v18 = vadd.f32 %v20_v14, %v19_v10  ;;  %v28_v19 = vrot.slane %v27_v15, 2  ;;  %v36_v20 = vadd.f32 %v35_v16, %v34_v12  ;;  %v42_v21 = vrot.slane %v41_v17, 2 }
   0xb   :  { %v22_v22 = vrot.slane %v21_v18, 1  ;;  %v29_v23 = vadd.f32 %v28_v19, %v27_v15  ;;  %v37_v24 = vrot.slane %v36_v20, 1  ;;  %v43_v25 = vadd.f32 %v42_v21, %v41_v17 }
   0xd   :  { %v23_v26 = vadd.f32 %v22_v22, %v21_v18  ;;  %v30_v27 = vrot.slane %v29_v23, 1  ;;  %v38_v28 = vadd.f32 %v37_v24, %v36_v20  ;;  %v44_v29 = vrot.slane %v43_v25, 1 }
   0xf   :  { %v31_v30 = vadd.f32 %v30_v27, %v29_v23  ;;  %v45_v31 = vadd.f32 %v44_v29, %v43_v25  ;;  %v47_v32 = vmul.f32 0.25, %v23_v26  ;;  %v49_v33 = vmul.f32 0.25, %v38_v28 }
  0x11   :  { %v48_v34 = vmul.f32 0.25, %v31_v30  ;;  %v50_v35 = vmul.f32 0.25, %v45_v31  ;;  %v56_v36 = vsel %vm55_vm2, %v49_v33, %v47_v32 }
  0x12   :  { %v61_v37 = vsel %vm60_vm3, %v56_v36, -inf }
  0x13   :  { %v57_v38 = vsel %vm55_vm2, %v50_v35, %v48_v34 }
  0x14   :  { %v63_v39 = vsel %vm62_vm4, %v57_v38, -inf }
  0x15   :  { %v64_v40 = vmax.f32 %v61_v37, %v63_v39 }
  0x17   :  { %65 = vmax.xlane.f32.xlu0 %v64_v40 }
  0xa0   :  { %v66_v44 = vpop.xlane.xlu0 %65 }
  0xa1   :  { %v67_v45 = vmul.f32 0.3, %v66_v44 }
  0xa3   :  { %v69_v47 = vrot.slane %v67_v45, 1  ;;  %vm72_vm5 = vcmp.gt.f32.partialorder %v47_v32, %v67_v45  ;;  %vm73_vm6 = vcmp.gt.f32.partialorder %v48_v34, %v67_v45 }
  0xa4   :  { %v124_v50 = vsel %vm72_vm5, 1.0, %v133_v49  ;;  %v125_v51 = vsel %vm73_vm6, 1.0, %v133_v49 }
  0xa5   :  { %vm74_vm7 = vcmp.gt.f32.partialorder %v49_v33, %v69_v47  ;;  %vm75_vm8 = vcmp.gt.f32.partialorder %v50_v35, %v69_v47  ;;  %v88_v54 = vcombine.low %v124_v50, %v125_v51 }
  0xa6   :  { %v126_v52 = vsel %vm74_vm7, 1.0, %v133_v49  ;;  %v127_v53 = vsel %vm75_vm8, 1.0, %v133_v49 }
  0xa7   :  { %v96_v56 = vcombine.low %v126_v52, %v127_v53  ;;  %v95_v58 = vrot.slane %v88_v54, %v94_v55 }
  0xa9   :  { %v103_v57 = vrot.slane %v96_v56, %v94_v55 }
  0xab   :  { %v108_v59 = vrot.slane %v103_v57, 7 }
  0xad   :  { %v109_v60 = vsel %vm55_vm2, %v108_v59, %v95_v58 }
  0xae   :  { %v111_v61 = vsel %vm110_vm10, %v108_v59, %v109_v60 }
  0xaf   :  { %v113_v62 = vsel %vm112_vm11, %v108_v59, %v111_v61 }
  0xb0   :  { %v115_v63 = vsel %vm114_vm12, %v108_v59, %v113_v62 }
  0xb1   :  { %119 = vst.msk [vmem:[%s159_s1] sm:$0xf] %vm118_vm13, %v115_v63 }

</bundles_post_ra>
